<compile_context>
chip_gen: v5e
topology: v5e:2x2
jax: 0.10.0
libtpu: 0.0.40
codegen_flags: <defaults>
</compile_context>

<pallas_src>
import math
import functools

import jax
import jax.numpy as jnp
from jax.experimental import pallas as pl
from jax.experimental.pallas import tpu as pltpu


def make_pos_embedding_table(d_model: int, max_len: int = 5000) -> jnp.ndarray:
    """Sinusoidal table, exactly as in the PyTorch __init__ (note: log(1000.0) per spec)."""
    position = jnp.arange(0, max_len, dtype=jnp.float32)[:, None]            # (max_len, 1)
    div_term = jnp.exp(
        jnp.arange(0, d_model, 2, dtype=jnp.float32) * (-math.log(1000.0) / d_model)
    )                                                                         # (d_model//2,)
    angles = position * div_term                                              # (max_len, d_model//2)
    pe = jnp.zeros((max_len, d_model), dtype=jnp.float32)
    pe = pe.at[:, 0::2].set(jnp.sin(angles))
    pe = pe.at[:, 1::2].set(jnp.cos(angles))
    return pe


def _add_pe_kernel(x_ref, pe_ref, o_ref):
    # x_ref: (B, TL), pe_ref: (1, TL) -> rank-matched sublane broadcast, lane-dense store.
    o_ref[...] = x_ref[...] + pe_ref[...]


def _add_pe_dropout_kernel(x_ref, pe_ref, mask_ref, o_ref, *, inv_keep: float):
    # Inverted dropout: mask is {0, 1}; survivors scaled by 1/(1-p).  No zeros_like temp.
    y = x_ref[...] + pe_ref[...]
    o_ref[...] = y * (mask_ref[...] * inv_keep)


def position_embedding_forward(x, pe_table, *, p: float = 0.1,
                               training: bool = False, rng_key=None):
    """x: (B, S, D). Returns x + pe[:S], with inverted dropout when training."""
    B, S, D = x.shape
    L = S * D
    dtype = x.dtype

    # Lane-dense flat layout.
    x_flat = x.reshape(B, L)
    pe_flat = pe_table[:S, :].reshape(1, L).astype(dtype)

    apply_dropout = bool(training) and p > 0.0
    keep_prob = 1.0 - float(p)
    inv_keep = (1.0 / keep_prob) if keep_prob > 0.0 else 0.0   # p >= 1 -> all dropped

    # ---- tile size along the flat L axis, sized for the smallest scoped-VMEM budget ----
    bytes_per = jnp.dtype(dtype).itemsize
    n_streams = 3 if apply_dropout else 2                 # x, (mask), out blocks of (B, TL)
    budget = 12 * 1024 * 1024                             # conservative across v5e/v6e/v7x
    denom = 2 * (n_streams * B + 1) * bytes_per           # double-buffered blocks (+ pe tile)
    tl_max = max(128, (budget // denom) // 128 * 128)
    TL = L if L <= tl_max else int(tl_max)
    grid = (pl.cdiv(L, TL),)

    blk_bl = pl.BlockSpec((B, TL), lambda t: (0, t))       # x / mask / out blocks
    blk_pe = pl.BlockSpec((1, TL), lambda t: (0, t))       # pe tile, reused across batch rows

    cost = pl.CostEstimate(
        flops=(2 if apply_dropout else 1) * B * L,
        transcendentals=0,
        bytes_accessed=(n_streams * B + 1) * L * bytes_per,
    )

    if apply_dropout:
        if rng_key is None:
            rng_key = jax.random.PRNGKey(0)
        # TODO(synk): on a real TPU, in-kernel pltpu.prng_seed + prng_random_bits would
        # avoid this extra HBM stream, but those primitives do not lower in the CPU
        # interpret checker, so the keep-mask is produced with stock jax.random instead.
        mask = jax.random.bernoulli(rng_key, keep_prob, (B, L)).astype(dtype)
        kernel = functools.partial(_add_pe_dropout_kernel, inv_keep=inv_keep)
        in_specs = [blk_bl, blk_pe, blk_bl]
        args = (x_flat, pe_flat, mask)
    else:
        kernel = _add_pe_kernel
        in_specs = [blk_bl, blk_pe]
        args = (x_flat, pe_flat)

    out_flat = pl.pallas_call(
        kernel,
        out_shape=jax.ShapeDtypeStruct((B, L), dtype),
        grid=grid,
        in_specs=in_specs,
        out_specs=blk_bl,
        compiler_params=pltpu.CompilerParams(
            dimension_semantics=("parallel",),
        ),
        cost_estimate=cost,
        input_output_aliases={0: 0},   # output aliases x: pure elementwise update
    )(*args)

    return out_flat.reshape(B, S, D)


if __name__ == "__main__":
    d_model = 32
    max_len = 5000
    batch, seq = 2, 8
    p = 0.1

    key = jax.random.PRNGKey(0)
    kx, kd = jax.random.split(key)
    x = jax.random.normal(kx, (batch, seq, d_model), dtype=jnp.float32)

    pe_table = make_pos_embedding_table(d_model, max_len)

    # Eval mode: dropout is identity -> deterministic check against the reference add.
    out_eval = jax.block_until_ready(
        position_embedding_forward(x, pe_table, p=p, training=False))
    ref = x + pe_table[None, :seq, :]
    assert out_eval.shape == (batch, seq, d_model)
    assert jnp.allclose(out_eval, ref, atol=1e-6), "eval-mode mismatch vs reference"

    # Training mode: inverted dropout; the same key reproduces the same keep-mask here.
    out_train = jax.block_until_ready(
        position_embedding_forward(x, pe_table, p=p, training=True, rng_key=kd))
    keep = jax.random.bernoulli(kd, 1.0 - p, (batch, seq * d_model)).astype(jnp.float32)
    inv_keep = 1.0 / (1.0 - p)
    ref_train = (ref.reshape(batch, -1) * (keep * inv_keep)).reshape(batch, seq, d_model)
    assert out_train.shape == (batch, seq, d_model)
    assert jnp.allclose(out_train, ref_train, atol=1e-5), "train-mode mismatch vs reference"

    print("KERNEL_OK")
</pallas_src>

<mosaic_0001>
module attributes {stable_mosaic.version = 11 : i64} {
  func.func @_add_pe_kernel(%arg0: i32, %arg1: memref<2x256xf32, #tpu.memory_space<vmem>>, %arg2: memref<1x256xf32, #tpu.memory_space<vmem>>, %arg3: memref<2x256xf32, #tpu.memory_space<vmem>>) attributes {dimension_semantics = [#tpu.dimension_semantics<parallel>], iteration_bounds = array<i64: 1>, scalar_prefetch = 0 : i64, scratch_operands = 0 : i64, tpu.core_type = #tpu.core_type<tc>, window_params = [{transform_indices = @transform_0, window_bounds = array<i64: 2, 256>}, {transform_indices = @transform_1, window_bounds = array<i64: 1, 256>}, {transform_indices = @transform_2, window_bounds = array<i64: 2, 256>}]} {
    %c0 = arith.constant 0 : index
    %c0_0 = arith.constant 0 : index
    %0 = vector.load %arg1[%c0, %c0_0] : memref<2x256xf32, #tpu.memory_space<vmem>>, vector<2x256xf32>
    %c0_1 = arith.constant 0 : index
    %c0_2 = arith.constant 0 : index
    %1 = vector.load %arg2[%c0_1, %c0_2] : memref<1x256xf32, #tpu.memory_space<vmem>>, vector<1x256xf32>
    %2 = vector.broadcast %1 : vector<1x256xf32> to vector<2x256xf32>
    %3 = arith.addf %0, %2 : vector<2x256xf32>
    %c0_3 = arith.constant 0 : index
    %c0_4 = arith.constant 0 : index
    %4 = vector.load %arg3[%c0_3, %c0_4] : memref<2x256xf32, #tpu.memory_space<vmem>>, vector<2x256xf32>
    tpu.vector_store %arg3[%c0_3, %c0_4], %3 {strides = array<i32>} : memref<2x256xf32, #tpu.memory_space<vmem>>, vector<2x256xf32>,
    return
  }
  func.func @transform_0(%arg0: i32) -> (i32, i32) {
    %c0_i32 = arith.constant 0 : i32
    %c0_i32_0 = arith.constant 0 : i32
    return %c0_i32, %arg0 : i32, i32
  }
  func.func @transform_1(%arg0: i32) -> (i32, i32) {
    %c0_i32 = arith.constant 0 : i32
    %c0_i32_0 = arith.constant 0 : i32
    return %c0_i32, %arg0 : i32, i32
  }
  func.func @transform_2(%arg0: i32) -> (i32, i32) {
    %c0_i32 = arith.constant 0 : i32
    %c0_i32_0 = arith.constant 0 : i32
    return %c0_i32, %arg0 : i32, i32
  }
}

</mosaic_0001>

<bundles_post_ra>
// kernel: tpu_custom_call.1
= control target key start
LH: loop header
LB: loop body
LE: loop exit
PB: predicated region body
PF: predicated region fallthrough
CT: control target
= control target key end

     0   :  { %7 = vsyncpa [#allocation3], 0  ;;  %s134_s0 = inlined_call_operand.hbm [shape: f32[2,256], index: 0, kind: input, shape index: {}, may-alias: {0,2}]   ;;  %s135_s1 = inlined_call_operand.vmem [shape: f32[1,256], index: 1, kind: input, shape index: {}]   ;;  %s136_s2 = inlined_call_operand.hbm [shape: f32[2,256], index: 2, kind: output, shape index: {}, may-alias: {0,2}]  }
   0x1   :  { %8 = vsyncpa [#allocation4], 0  ;;  %s14_s11 = sshll.u32 %s134_s0, 4  ;;  %s108_s12 = smov [#allocation2]   ;;  %s15_s11 = int_to_ptr.hbm [resolvable:$true] %s14_s11 }
   0x2   :  { %s16_s13 = sshll.u32 %s108_s12, 4  ;;  %s17_s13 = int_to_ptr.vmem [resolvable:$true] %s16_s13 }
   0x3   :  { %19 = dma.hbm_to_vmem [thread:$0]  %s15_s11, 64, %s17_s13, [#allocation3]  }
   0x4   :  { %104 = dma.done.wait [#allocation3], 64  }
   0x5   :  { %105 = vsyncadd [#allocation3], 4294967232  ;;  %v27_v0 = vld [vmem:[%s135_s1] sm:$0x3]  ;;  %vm32_vm0 = vcmask 1041408   ;;  %s109_s16 = smov [#allocation5]  }
   0x6   :  { %v29_v1 = vperm.slane %v27_v0, 0  ;;  %v30_v2 = vperm.slane %v27_v0, 1  ;;  %v26_v3 = vld [vmem:[#allocation2] sm:$0xf]  ;;  %s42_s17 = sshll.u32 %s109_s16, 4  ;;  %s44_s19 = sshll.u32 %s136_s2, 4  ;;  %s43_s17 = int_to_ptr.vmem [resolvable:$true] %s42_s17  ;;  %s45_s19 = int_to_ptr.hbm [resolvable:$true] %s44_s19 }
   0x8   :  { %v31_v4 = vrot.slane %v30_v2, 6 }
   0xa   :  { %v33_v5 = vsel %vm32_vm0, %v29_v1, %v31_v4 }
   0xb   :  { %v35_v6 = vadd.f32 %v33_v5, %v26_v3 }
   0xd   :  { %36 = vst [vmem:[#allocation5] sm:$0xf] %v35_v6 }
   0xe   :  { %47 = dma.vmem_to_hbm [thread:$0]  %s43_s17, 64, %s45_s19, [#allocation4]  }
   0xf   :  { %106 = dma.done.wait [#allocation4], 64  }
  0x10   :  { %107 = vsyncadd [#allocation4], 4294967232 }
  0x11   :  { %52 = vsyncpa [#allocation3], 1 }
  0x12   :  { %53 = vsyncpa [#allocation4], 1 }

</bundles_post_ra>
